<compile_context>
chip_gen: v5e
topology: v5e:2x2
jax: 0.10.0
libtpu: 0.0.40
codegen_flags: <defaults>
</compile_context>

<pallas_src>
import functools

import jax
import jax.numpy as jnp
import numpy as np
from jax.experimental import pallas as pl
from jax.experimental.pallas import tpu as pltpu

jax.config.update("jax_default_matmul_precision", "highest")


def _sigmoid(x):
    # tanh-based logistic; identical formula in kernel and reference.
    return 0.5 * (jnp.tanh(0.5 * x) + 1.0)


# ---------------------------------------------------------------------------
# Batched dense kernel: y = x @ W + b (+ ReLU).  Grid only over row blocks,
# lane-dense output (N = 8H for the gate precompute).
# ---------------------------------------------------------------------------
def _dense_kernel(x_ref, w_ref, b_ref, o_ref, *, activation):
    y = jnp.dot(x_ref[...], w_ref[...],
                preferred_element_type=jnp.float32) + b_ref[...]
    if activation == "relu":
        y = jnp.maximum(y, 0.0)
    o_ref[...] = y.astype(o_ref.dtype)


def dense(x, w, b, activation=None, block_m=256):
    M, K = x.shape
    N = w.shape[1]
    bm = min(M, block_m)
    grid_m = pl.cdiv(M, bm)
    kernel = functools.partial(_dense_kernel, activation=activation)
    return pl.pallas_call(
        kernel,
        out_shape=jax.ShapeDtypeStruct((M, N), jnp.float32),
        grid=(grid_m,),
        in_specs=[
            pl.BlockSpec((bm, K), lambda i: (i, 0)),
            pl.BlockSpec((K, N), lambda i: (0, 0)),
            pl.BlockSpec((1, N), lambda i: (0, 0)),
        ],
        out_specs=pl.BlockSpec((bm, N), lambda i: (i, 0)),
        compiler_params=pltpu.CompilerParams(
            dimension_semantics=("parallel",)),
    )(x, w, b.reshape(1, N))


# ---------------------------------------------------------------------------
# Bidirectional LSTM recurrence kernel (single invocation, fori_loop over T).
#   gates_ref : (T, B, 8H)  precomputed x@W_ih + bias, [forward | backward]
#   whh_*_ref : (H, 4H)     recurrent weights (transposed vs. PyTorch)
#   len_ref   : (B, 1) i32  sequence lengths (pack_padded semantics)
#   yf/yb_ref : (T, B, H)   per-direction outputs (time-major)
# Gate order matches PyTorch: i, f, g, o.
# ---------------------------------------------------------------------------
def _bilstm_kernel(gates_ref, whh_f_ref, whh_b_ref, len_ref,
                   yf_ref, yb_ref, *, T, H):
    G = 4 * H
    B = yf_ref.shape[1]
    lens = len_ref[...]                       # (B, 1) int32
    whh_f = whh_f_ref[...]
    whh_b = whh_b_ref[...]

    def lstm_cell(g, h, c, whh):
        g = g + jnp.dot(h, whh, preferred_element_type=jnp.float32)
        i = _sigmoid(g[:, 0:H])
        f = _sigmoid(g[:, H:2 * H])
        gc = jnp.tanh(g[:, 2 * H:3 * H])
        o = _sigmoid(g[:, 3 * H:4 * H])
        c_new = f * c + i * gc
        h_new = o * jnp.tanh(c_new)
        return h_new, c_new

    def step(t, carry):
        hf, cf, hb, cb = carry
        # ---- forward direction, time t ----
        row_f = gates_ref[t]                  # (B, 8H)
        h_new, c_new = lstm_cell(row_f[:, 0:G], hf, cf, whh_f)
        m_f = t < lens                        # (B, 1) bool
        hf = jnp.where(m_f, h_new, 0.0)
        cf = jnp.where(m_f, c_new, 0.0)
        yf_ref[t] = hf
        # ---- backward direction, time T-1-t ----
        tb = T - 1 - t
        row_b = gates_ref[tb]
        h_new, c_new = lstm_cell(row_b[:, G:2 * G], hb, cb, whh_b)
        m_b = tb < lens
        hb = jnp.where(m_b, h_new, 0.0)
        cb = jnp.where(m_b, c_new, 0.0)
        yb_ref[tb] = hb
        return hf, cf, hb, cb

    z = jnp.zeros((B, H), jnp.float32)
    jax.lax.fori_loop(0, T, step, (z, z, z, z))


def bilstm_recurrence(gates, whh_f, whh_b, lens_i):
    T, B, G2 = gates.shape
    H = G2 // 8
    kernel = functools.partial(_bilstm_kernel, T=T, H=H)
    yf, yb = pl.pallas_call(
        kernel,
        out_shape=(jax.ShapeDtypeStruct((T, B, H), jnp.float32),
                   jax.ShapeDtypeStruct((T, B, H), jnp.float32)),
        grid=(1,),
        in_specs=[
            pl.BlockSpec((T, B, G2), lambda i: (0, 0, 0)),
            pl.BlockSpec((H, 4 * H), lambda i: (0, 0)),
            pl.BlockSpec((H, 4 * H), lambda i: (0, 0)),
            pl.BlockSpec((B, 1), lambda i: (0, 0)),
        ],
        out_specs=(
            pl.BlockSpec((T, B, H), lambda i: (0, 0, 0)),
            pl.BlockSpec((T, B, H), lambda i: (0, 0, 0)),
        ),
        compiler_params=pltpu.CompilerParams(
            dimension_semantics=("arbitrary",)),
    )(gates, whh_f, whh_b, lens_i)
    return yf, yb


# ---------------------------------------------------------------------------
# pBLSTM forward (Pallas) and pure-JAX reference.
# ---------------------------------------------------------------------------
def pblstm_forward(xpad, ilens, params, subsample):
    ilens = np.asarray(ilens, np.int64)
    x = jnp.asarray(xpad, jnp.float32)
    for li, p in enumerate(params):
        B, T, I = x.shape
        H = p["whh_f"].shape[0]
        G = 4 * H
        # (1) batched input->gate matmul for both directions (lane-dense 8H).
        wih = jnp.concatenate([p["wih_f"], p["wih_b"]], axis=1)     # (I, 8H)
        bih = jnp.concatenate([p["b_f"], p["b_b"]], axis=0)         # (8H,)
        xt = jnp.transpose(x, (1, 0, 2)).reshape(T * B, I)          # time-major rows
        gates = dense(xt, wih, bih).reshape(T, B, 2 * G)
        # (2) bidirectional recurrence, single kernel, length-masked.
        lens_i = jnp.asarray(ilens, jnp.int32).reshape(B, 1)
        yf, yb = bilstm_recurrence(gates, p["whh_f"], p["whh_b"], lens_i)
        ys = jnp.concatenate([yf, yb], axis=-1)                     # (T, B, 2H)
        ys = jnp.transpose(ys, (1, 0, 2))                           # (B, T, 2H)
        # TODO(synk): dropout_layer is identity here (eval / p=0).
        ys = ys[:, :int(ilens.max()), :]                            # pad_packed truncation
        sub = subsample[li]
        if sub > 1:
            if ys.shape[1] % 2 == 1:                                # replicate-pad last frame
                ys = jnp.concatenate([ys, ys[:, -1:, :]], axis=1)
            ys = ys.reshape(B, ys.shape[1] // 2, 4 * H)
            ilens = np.array([(int(l) + 1) // sub for l in ilens], np.int64)
        Tp = ys.shape[1]
        # (3) projection + ReLU, all rows in one batched matmul.
        proj = dense(ys.reshape(B * Tp, ys.shape[2]), p["wproj"], p["bproj"],
                     activation="relu")
        x = proj.reshape(B, Tp, H)
    return x, [int(v) for v in ilens]


def _lstm_dir_ref(gates, whh, lens, reverse):
    B, T, G = gates.shape
    H = G // 4
    lens = jnp.asarray(lens, jnp.int32)[:, None]

    def step(carry, t):
        h, c = carry
        g = gates[:, t, :] + jnp.dot(h, whh)
        i = _sigmoid(g[:, 0:H])
        f = _sigmoid(g[:, H:2 * H])
        gc = jnp.tanh(g[:, 2 * H:3 * H])
        o = _sigmoid(g[:, 3 * H:4 * H])
        c_new = f * c + i * gc
        h_new = o * jnp.tanh(c_new)
        mask = t < lens
        h = jnp.where(mask, h_new, 0.0)
        c = jnp.where(mask, c_new, 0.0)
        return (h, c), h

    ts = jnp.arange(T)
    if reverse:
        ts = ts[::-1]
    init = (jnp.zeros((B, H), jnp.float32), jnp.zeros((B, H), jnp.float32))
    _, hs = jax.lax.scan(step, init, ts)            # (T, B, H) in scan order
    hs = jnp.transpose(hs, (1, 0, 2))
    if reverse:
        hs = hs[:, ::-1, :]
    return hs


def pblstm_reference(xpad, ilens, params, subsample):
    ilens = np.asarray(ilens, np.int64)
    x = jnp.asarray(xpad, jnp.float32)
    for li, p in enumerate(params):
        B, T, _ = x.shape
        H = p["whh_f"].shape[0]
        gf = x @ p["wih_f"] + p["b_f"]
        gb = x @ p["wih_b"] + p["b_b"]
        yf = _lstm_dir_ref(gf, p["whh_f"], ilens, reverse=False)
        yb = _lstm_dir_ref(gb, p["whh_b"], ilens, reverse=True)
        ys = jnp.concatenate([yf, yb], axis=-1)
        ys = ys[:, :int(ilens.max()), :]
        sub = subsample[li]
        if sub > 1:
            if ys.shape[1] % 2 == 1:
                ys = jnp.concatenate([ys, ys[:, -1:, :]], axis=1)
            ys = ys.reshape(B, ys.shape[1] // 2, 4 * H)
            ilens = np.array([(int(l) + 1) // sub for l in ilens], np.int64)
        x = jax.nn.relu(ys @ p["wproj"] + p["bproj"])
    return x, [int(v) for v in ilens]


def make_params(key, input_dim, hidden, n_layers, subsample):
    params = []
    for i in range(n_layers):
        idim = input_dim if i == 0 else hidden
        pdim = hidden * 4 if subsample[i] > 1 else hidden * 2
        key, *ks = jax.random.split(key, 9)
        s = 1.0 / np.sqrt(hidden)
        params.append({
            "wih_f": s * jax.random.normal(ks[0], (idim, 4 * hidden), jnp.float32),
            "whh_f": s * jax.random.normal(ks[1], (hidden, 4 * hidden), jnp.float32),
            "b_f":   s * jax.random.normal(ks[2], (4 * hidden,), jnp.float32),
            "wih_b": s * jax.random.normal(ks[3], (idim, 4 * hidden), jnp.float32),
            "whh_b": s * jax.random.normal(ks[4], (hidden, 4 * hidden), jnp.float32),
            "b_b":   s * jax.random.normal(ks[5], (4 * hidden,), jnp.float32),
            "wproj": s * jax.random.normal(ks[6], (pdim, hidden), jnp.float32),
            "bproj": s * jax.random.normal(ks[7], (hidden,), jnp.float32),
        })
    return params


if __name__ == "__main__":
    # Small deterministic config: B=2, T=16, input_dim=32, hidden_dim=32,
    # n_layers=2, subsample=[1, 2], dropout_rate=0 (eval-mode identity).
    B, T = 2, 16
    input_dim, hidden, n_layers = 32, 32, 2
    subsample = [1, 2]

    key = jax.random.PRNGKey(0)
    kp, kx = jax.random.split(key)
    params = make_params(kp, input_dim, hidden, n_layers, subsample)
    xpad = jax.random.normal(kx, (B, T, input_dim), jnp.float32)
    ilens = [16, 12]            # ragged lengths exercise the pack_padded masking

    out, olens = pblstm_forward(xpad, ilens, params, subsample)
    jax.block_until_ready(out)

    out_ref, olens_ref = pblstm_reference(xpad, ilens, params, subsample)
    np.testing.assert_allclose(np.asarray(out), np.asarray(out_ref),
                               rtol=1e-3, atol=1e-3)
    assert olens == olens_ref, (olens, olens_ref)

    print("KERNEL_OK")
</pallas_src>

<mosaic_0001>
module attributes {stable_mosaic.version = 11 : i64} {
  func.func @_dense_kernel(%arg0: i32, %arg1: memref<32x32xf32, #tpu.memory_space<vmem>>, %arg2: memref<32x256xf32, #tpu.memory_space<vmem>>, %arg3: memref<1x256xf32, #tpu.memory_space<vmem>>, %arg4: memref<32x256xf32, #tpu.memory_space<vmem>>) attributes {dimension_semantics = [#tpu.dimension_semantics<parallel>], iteration_bounds = array<i64: 1>, scalar_prefetch = 0 : i64, scratch_operands = 0 : i64, tpu.core_type = #tpu.core_type<tc>, window_params = [{transform_indices = @transform_0, window_bounds = array<i64: 32, 32>}, {pipeline_mode = #tpu.pipeline_mode<synchronous>, transform_indices = @transform_1, window_bounds = array<i64: 32, 256>}, {pipeline_mode = #tpu.pipeline_mode<synchronous>, transform_indices = @transform_2, window_bounds = array<i64: 1, 256>}, {transform_indices = @transform_3, window_bounds = array<i64: 32, 256>}]} {
    %c0 = arith.constant 0 : index
    %c0_0 = arith.constant 0 : index
    %0 = vector.load %arg1[%c0, %c0_0] : memref<32x32xf32, #tpu.memory_space<vmem>>, vector<32x32xf32>
    %c0_1 = arith.constant 0 : index
    %c0_2 = arith.constant 0 : index
    %1 = vector.load %arg2[%c0_1, %c0_2] : memref<32x256xf32, #tpu.memory_space<vmem>>, vector<32x256xf32>
    %cst = arith.constant dense<0.000000e+00> : vector<32x256xf32>
    %2 = tpu.matmul %0, %1, %cst {dimension_numbers = #tpu.dot_dimension_numbers<[1], [0], [0], [1], [0, 0, 1, 1], [], []>, precision = #tpu.contract_precision<fp32>} : vector<32x32xf32>, vector<32x256xf32>, vector<32x256xf32> -> vector<32x256xf32>
    %c0_3 = arith.constant 0 : index
    %c0_4 = arith.constant 0 : index
    %3 = vector.load %arg3[%c0_3, %c0_4] : memref<1x256xf32, #tpu.memory_space<vmem>>, vector<1x256xf32>
    %4 = vector.broadcast %3 : vector<1x256xf32> to vector<32x256xf32>
    %5 = arith.addf %2, %4 : vector<32x256xf32>
    %c0_5 = arith.constant 0 : index
    %c0_6 = arith.constant 0 : index
    %6 = vector.load %arg4[%c0_5, %c0_6] : memref<32x256xf32, #tpu.memory_space<vmem>>, vector<32x256xf32>
    tpu.vector_store %arg4[%c0_5, %c0_6], %5 {strides = array<i32>} : memref<32x256xf32, #tpu.memory_space<vmem>>, vector<32x256xf32>,
    return
  }
  func.func @transform_0(%arg0: i32) -> (i32, i32) {
    %c0_i32 = arith.constant 0 : i32
    %c0_i32_0 = arith.constant 0 : i32
    return %arg0, %c0_i32 : i32, i32
  }
  func.func @transform_1(%arg0: i32) -> (i32, i32) {
    %c0_i32 = arith.constant 0 : i32
    %c0_i32_0 = arith.constant 0 : i32
    %c0_i32_1 = arith.constant 0 : i32
    return %c0_i32, %c0_i32_0 : i32, i32
  }
  func.func @transform_2(%arg0: i32) -> (i32, i32) {
    %c0_i32 = arith.constant 0 : i32
    %c0_i32_0 = arith.constant 0 : i32
    %c0_i32_1 = arith.constant 0 : i32
    return %c0_i32, %c0_i32_0 : i32, i32
  }
  func.func @transform_3(%arg0: i32) -> (i32, i32) {
    %c0_i32 = arith.constant 0 : i32
    %c0_i32_0 = arith.constant 0 : i32
    return %arg0, %c0_i32 : i32, i32
  }
}

</mosaic_0001>

<bundles_post_ra>
// kernel: tpu_custom_call.1
= control target key start
LH: loop header
LB: loop body
LE: loop exit
PB: predicated region body
PF: predicated region fallthrough
CT: control target
= control target key end

     0   :  { %8 = vsyncpa [#allocation3], 0  ;;  %s993_s0 = inlined_call_operand.hbm [shape: f32[32,32], index: 0, kind: input, shape index: {}]   ;;  %s994_s1 = inlined_call_operand.hbm [shape: f32[32,256], index: 1, kind: input, shape index: {}]   ;;  %s995_s2 = inlined_call_operand.hbm [shape: f32[1,256], index: 2, kind: input, shape index: {}]   ;;  %s996_s3 = inlined_call_operand.hbm [shape: f32[32,256], index: 3, kind: output, shape index: {}]  }
   0x1   :  { %9 = vsyncpa [#allocation6], 0  ;;  %s28_s14 = sshll.u32 %s994_s1, 4  ;;  %s29_s14 = int_to_ptr.hbm [resolvable:$true] %s28_s14 }
   0x2   :  { %10 = vsyncpa [#allocation4], 0  ;;  %s785_s15 = smov [#allocation5]   ;;  %s15_s19 = sshll.u32 %s993_s0, 4  ;;  %s16_s19 = int_to_ptr.hbm [resolvable:$true] %s15_s19 }
   0x3   :  { %s30_s16 = sshll.u32 %s785_s15, 4  ;;  %s786_s20 = smov 256   ;;  %s31_s16 = int_to_ptr.vmem [resolvable:$true] %s30_s16 }
   0x4   :  { %s787_s21 = smov 16   ;;  %s788_s22 = smov [#allocation2]  }
   0x5   :  { %36 = dma.hbm_to_vmem [thread:$0]  %s29_s14, 1024, %s31_s16, [#allocation6], %s786_s20, %s786_s20, %s787_s21  }
   0x6   :  { %s17_s23 = sshll.u32 %s788_s22, 4  ;;  %s789_s1 = smov 128   ;;  %s18_s23 = int_to_ptr.vmem [resolvable:$true] %s17_s23 }
   0x7   :  { %s790_s24 = smov 8   ;;  %s42_s27 = sshll.u32 %s995_s2, 4  ;;  %s43_s27 = int_to_ptr.hbm [resolvable:$true] %s42_s27 }
   0x8   :  { %23 = dma.hbm_to_vmem [thread:$0]  %s16_s19, 512, %s18_s23, [#allocation3], %s789_s1, %s789_s1, %s790_s24  }
   0x9   :  { %s791_s28 = smov [#allocation7]  }
   0xa   :  { %s44_s0 = sshll.u32 %s791_s28, 4  ;;  %s45_s0 = int_to_ptr.vmem [resolvable:$true] %s44_s0 }
   0xb   :  { %47 = dma.hbm_to_vmem [thread:$0]  %s43_s27, 32, %s45_s0, [#allocation6]  }
   0xc   :  { %779 = dma.done.wait [#allocation3], 512  }
   0xd   :  { %780 = vsyncadd [#allocation3], 4294966784 }
   0xe   :  { %781 = dma.done.wait [#allocation6], 1056  }
   0xf   :  { %782 = vsyncadd [#allocation6], 4294966240  ;;  %vm78_vm0 = vcmask 261120   ;;  %v70_v0 = vld [vmem:[#allocation5 + $0x30] sm:$0xff]  ;;  %v68_v1 = vld [vmem:[#allocation5 + $0x20] sm:$0xff]  ;;  %s792_s2 = smov [#allocation8]  }
  0x10   :  { %v66_v2 = vld [vmem:[#allocation5 + $0x10] sm:$0xff]  ;;  %v825_v3 = vand.u32 4294901760, %v70_v0  ;;  %v827_v4 = vand.u32 4294901760, %v68_v1  ;;  %v64_v6 = vld [vmem:[#allocation5] sm:$0xff]  ;;  %v71_v8 = vld [vmem:[#allocation5 + $0x38] sm:$0xff]  ;;  %s659_s29 = sshll.u32 %s792_s2, 4  ;;  %s660_s29 = int_to_ptr.vmem [resolvable:$true] %s659_s29 }
  0x11   :  { %v829_v5 = vand.u32 4294901760, %v66_v2  ;;  %v60_v7 = vld [vmem:[#allocation2] sm:$0xff]  ;;  %v831_v9 = vand.u32 4294901760, %v64_v6  ;;  %v834_v11 = vand.u32 4294901760, %v71_v8  ;;  %v61_v12 = vld [vmem:[#allocation2 + $0x8] sm:$0xff]  ;;  %v62_v38 = vld [vmem:[#allocation2 + $0x10] sm:$0xff] }
  0x12   :  { %v80_v10 = vsel %vm78_vm0, %v60_v7, 0  ;;  %v69_v13 = vld [vmem:[#allocation5 + $0x28] sm:$0xff]  ;;  %104 = vmatpush.msra.mxu0 %v825_v3  ;;  %v157_v14 = vsub.f32 %v70_v0, %v825_v3  ;;  %v839_v15 = vsub.f32 %v68_v1, %v827_v4  ;;  %255 = vmatpush.msra.mxu3 %v825_v3  ;;  %v83_v20 = vsel %vm78_vm0, %v61_v12, 0  ;;  %v67_v39 = vld [vmem:[#allocation5 + $0x18] sm:$0xff]  ;;  %s661_s5 = sshll.u32 %s996_s3, 4  ;;  %s662_s5 = int_to_ptr.hbm [resolvable:$true] %s661_s5 }
  0x13   :  { %v843_v16 = vsub.f32 %v66_v2, %v829_v5  ;;  %v845_v17 = vand.u32 4294901760, %v80_v10  ;;  %v848_v18 = vsub.f32 %v64_v6, %v831_v9  ;;  %v851_v19 = vsub.f32 %v71_v8, %v834_v11  ;;  %v63_v46 = vld [vmem:[#allocation2 + $0x18] sm:$0xff]  ;;  %v65_v47 = vld [vmem:[#allocation5 + $0x8] sm:$0xff] }
  0x14   :  { %v854_v21 = vand.u32 4294901760, %v69_v13  ;;  %106 = vmatpush.msra.mxu0 %v827_v4  ;;  %211 = vmatpush.msra.mxu2 %v157_v14  ;;  %v158_v22 = vand.u32 4294901760, %v157_v14  ;;  %v164_v24 = vand.u32 4294901760, %v839_v15  ;;  %v865_v28 = vand.u32 4294901760, %v83_v20 }
  0x15   :  { %v858_v23 = vsub.f32 %v80_v10, %v845_v17  ;;  %v170_v25 = vand.u32 4294901760, %v843_v16  ;;  %257 = vmatpush.msra.mxu3 %v827_v4  ;;  %v436_v26 = vand.u32 4294901760, %v851_v19  ;;  %v176_v27 = vand.u32 4294901760, %v848_v18 }
  0x16   :  { %v868_v29 = vsub.f32 %v69_v13, %v854_v21  ;;  %108 = vmatpush.msra.mxu0 %v829_v5  ;;  %214 = vmatpush.msra.mxu2 %v839_v15  ;;  %v159_v30 = vsub.f32 %v157_v14, %v158_v22  ;;  %v165_v32 = vsub.f32 %v839_v15, %v164_v24  ;;  %v86_v50 = vsel %vm78_vm0, %v62_v38, 0 }
  0x17   :  { %v873_v31 = vand.u32 4294901760, %v858_v23  ;;  %v171_v33 = vsub.f32 %v843_v16, %v170_v25  ;;  %259 = vmatpush.msra.mxu3 %v829_v5  ;;  %v437_v34 = vsub.f32 %v851_v19, %v436_v26  ;;  %v177_v35 = vsub.f32 %v848_v18, %v176_v27 }
  0x18   :  { %v885_v36 = vsub.f32 %v83_v20, %v865_v28  ;;  %v442_v37 = vand.u32 4294901760, %v868_v29  ;;  %110 = vmatpush.msra.mxu0 %v831_v9  ;;  %v160_v40 = vand.u32 4294901760, %v159_v30  ;;  %217 = vmatpush.msra.mxu2 %v843_v16  ;;  %v166_v42 = vand.u32 4294901760, %v165_v32  ;;  %v72_v20 = vld [vmem:[#allocation7] sm:$0x3] }
  0x19   :  { %v114_v41 = vsub.f32 %v858_v23, %v873_v31  ;;  %261 = vmatpush.msra.mxu3 %v831_v9  ;;  %v438_v43 = vand.u32 4294901760, %v437_v34  ;;  %v172_v49 = vand.u32 4294901760, %v171_v33  ;;  %v903_v51 = vand.u32 4294901760, %v67_v39 }
  0x1a   :  { %302 = vmatpush.msrb.mxu0 %v158_v22  ;;  %v894_v44 = vand.u32 4294901760, %v885_v36  ;;  %v443_v45 = vsub.f32 %v868_v29, %v442_v37  ;;  %161 = vmatpush.msra.mxu1 %v160_v40  ;;  %v178_v52 = vand.u32 4294901760, %v177_v35  ;;  %v907_v54 = vand.u32 4294901760, %v86_v50 }
  0x1b   :  { %v899_v48 = vand.u32 4294901760, %v114_v41  ;;  %220 = vmatpush.msra.mxu2 %v848_v18  ;;  %265 = vmatmul.f32.vlgmr.msra.gmra.mxu3 %v873_v31  ;;  %v447_v56 = vsub.f32 %v67_v39, %v903_v51  ;;  %v89_v57 = vsel %vm78_vm0, %v63_v46, 0  ;;  %v387_v58 = vand.u32 4294901760, %v65_v47 }
  0x1c   :  { %223 = vmatmul.f32.vlgmr.msra.gmra.mxu2 %v858_v23  ;;  %v444_v53 = vand.u32 4294901760, %v443_v45  ;;  %167 = vmatpush.msra.mxu1 %v166_v42  ;;  %v122_v55 = vsub.f32 %v885_v36, %v894_v44  ;;  %v916_v59 = vsub.f32 %v86_v50, %v907_v54  ;;  %v919_v62 = vand.u32 4294901760, %v89_v57 }
  0x1d   :  { %116 = vmatmul.f32.vlgmr.msra.gmra.mxu0 %v899_v48  ;;  %382 = vmatpush.msrb.mxu2 %v834_v11  ;;  %v448_v60 = vand.u32 4294901760, %v447_v56  ;;  %v453_v61 = vsub.f32 %v65_v47, %v387_v58  ;;  %v74_v22 = vperm.slane %v72_v20, 0 }
  0x1e   :  { %439 = vmatpush.msrb.mxu3 %v438_v43  ;;  %173 = vmatpush.msra.mxu1 %v172_v49  ;;  %v123_v63 = vand.u32 4294901760, %v122_v55  ;;  %v922_v0 = vand.u32 4294901760, %v916_v59  ;;  %v935_v10 = vsub.f32 %v89_v57, %v919_v62 }
  0x1f   :  { %306 = vmatpush.msrb.mxu0 %v164_v24  ;;  %384 = vmatpush.msrb.mxu2 %v854_v21  ;;  %v449_v1 = vsub.f32 %v447_v56, %v448_v60  ;;  %v454_v2 = vand.u32 4294901760, %v453_v61 }
  0x20   :  { %445 = vmatpush.msrb.mxu3 %v444_v53  ;;  %179 = vmatpush.msra.mxu1 %v178_v52  ;;  %v130_v8 = vsub.f32 %v916_v59, %v922_v0 }
  0x21   :  { %310 = vmatpush.msrb.mxu0 %v170_v25  ;;  %181 = vmatmul.f32.vlgmr.msra.gmra.mxu1 %v845_v17  ;;  %v450_v6 = vand.u32 4294901760, %v449_v1  ;;  %v455_v7 = vsub.f32 %v453_v61, %v454_v2  ;;  %v75_v1 = vperm.slane %v72_v20, 1 }
  0x22   :  { %386 = vmatpush.msrb.mxu2 %v903_v51  ;;  %345 = vmatpush.msrb.mxu1 %v825_v3  ;;  %v131_v3 = vand.u32 4294901760, %v130_v8 }
  0x23   :  { %314 = vmatpush.msrb.mxu0 %v176_v27  ;;  %271 = vmatmul.f32.gmra.mxu3 %v894_v44  ;;  %v456_v12 = vand.u32 4294901760, %v455_v7 }
  0x24   :  { %228 = vmatmul.f32.gmra.mxu2 %v885_v36  ;;  %347 = vmatpush.msrb.mxu1 %v827_v4  ;;  %v137_v4 = vand.u32 4294901760, %v935_v10 }
  0x25   :  { %124 = vmatmul.f32.gmra.mxu0 %v123_v63  ;;  %451 = vmatpush.msrb.mxu3 %v450_v6 }
  0x26   :  { %388 = vmatpush.msrb.mxu2 %v387_v58  ;;  %349 = vmatpush.msrb.mxu1 %v829_v5  ;;  %v138_v5 = vsub.f32 %v935_v10, %v137_v4 }
  0x27   :  { %457 = vmatpush.msrb.mxu3 %v456_v12  ;;  %489 = vmatpush.msra.mxu0 %v851_v19 }
  0x28   :  { %580 = vmatpush.msra.mxu2 %v436_v26  ;;  %351 = vmatpush.msrb.mxu1 %v831_v9  ;;  %v139_v9 = vand.u32 4294901760, %v138_v5 }
  0x29   :  { %623 = vmatpush.msra.mxu3 %v834_v11  ;;  %185 = vmatmul.f32.gmra.mxu1 %v865_v28 }
  0x2a   :  { %584 = vmatpush.msra.mxu2 %v442_v37  ;;  %533 = vmatpush.msra.mxu1 %v834_v11 }
  0x2b   :  { %492 = vmatpush.msra.mxu0 %v868_v29  ;;  %277 = vmatmul.f32.gmra.mxu3 %v922_v0 }
  0x2c   :  { %233 = vmatmul.f32.gmra.mxu2 %v916_v59  ;;  %625 = vmatpush.msra.mxu3 %v854_v21 }
  0x2d   :  { %132 = vmatmul.f32.gmra.mxu0 %v131_v3  ;;  %535 = vmatpush.msra.mxu1 %v854_v21 }
  0x2e   :  { %588 = vmatpush.msra.mxu2 %v448_v60  ;;  %495 = vmatpush.msra.mxu0 %v447_v56 }
  0x2f   :  { %627 = vmatpush.msra.mxu3 %v903_v51  ;;  %537 = vmatpush.msra.mxu1 %v903_v51 }
  0x30   :  { %592 = vmatpush.msra.mxu2 %v454_v2  ;;  %498 = vmatpush.msra.mxu0 %v453_v61 }
  0x31   :  { %629 = vmatpush.msra.mxu3 %v387_v58  ;;  %189 = vmatmul.f32.gmra.mxu1 %v907_v54 }
  0x32   :  { %539 = vmatpush.msra.mxu1 %v387_v58 }
  0x33   :  { %283 = vmatmul.f32.gmra.mxu3 %v137_v4 }
  0x34   :  { %238 = vmatmul.f32.gmra.mxu2 %v935_v10 }
  0x35   :  { %140 = vmatmul.f32.gmra.mxu0 %v139_v9 }
  0x39   :  { %193 = vmatmul.f32.gmra.mxu1 %v919_v62 }
  0x3b   :  { %459 = vmatmul.f32.vlgmr.msrb.gmra.mxu3 %v845_v17 }
  0x3c   :  { %394 = vmatmul.f32.vlgmr.msrb.gmra.mxu2 %v899_v48 }
  0x3d   :  { %316 = vmatmul.f32.vlgmr.msrb.gmra.mxu0 %v845_v17 }
  0x41   :  { %353 = vmatmul.f32.vlgmr.msrb.gmra.mxu1 %v845_v17 }
  0x43   :  { %463 = vmatmul.f32.gmra.mxu3 %v865_v28 }
  0x44   :  { %402 = vmatmul.f32.gmra.mxu2 %v123_v63 }
  0x45   :  { %320 = vmatmul.f32.gmra.mxu0 %v865_v28 }
  0x49   :  { %357 = vmatmul.f32.gmra.mxu1 %v865_v28 }
  0x4b   :  { %467 = vmatmul.f32.gmra.mxu3 %v907_v54 }
  0x4c   :  { %410 = vmatmul.f32.gmra.mxu2 %v131_v3 }
  0x4d   :  { %324 = vmatmul.f32.gmra.mxu0 %v907_v54 }
  0x51   :  { %361 = vmatmul.f32.gmra.mxu1 %v907_v54 }
  0x53   :  { %471 = vmatmul.f32.gmra.mxu3 %v919_v62 }
  0x54   :  { %418 = vmatmul.f32.gmra.mxu2 %v139_v9 }
  0x55   :  { %328 = vmatmul.f32.gmra.mxu0 %v919_v62 }
  0x59   :  { %365 = vmatmul.f32.gmra.mxu1 %v919_v62 }
  0x5b   :  { %631 = vmatmul.f32.vlgmr.msra.gmra.mxu3 %v845_v17 }
  0x5c   :  { %594 = vmatmul.f32.vlgmr.msra.gmra.mxu2 %v845_v17 }
  0x5d   :  { %501 = vmatmul.f32.vlgmr.msra.gmra.mxu0 %v858_v23 }
  0x61   :  { %543 = vmatmul.f32.vlgmr.msra.gmra.mxu1 %v873_v31 }
  0x63   :  { %635 = vmatmul.f32.gmra.mxu3 %v865_v28 }
  0x64   :  { %598 = vmatmul.f32.gmra.mxu2 %v865_v28 }
  0x65   :  { %506 = vmatmul.f32.gmra.mxu0 %v885_v36 }
  0x69   :  { %549 = vmatmul.f32.gmra.mxu1 %v894_v44 }
  0x6b   :  { %639 = vmatmul.f32.gmra.mxu3 %v907_v54 }
  0x6c   :  { %602 = vmatmul.f32.gmra.mxu2 %v907_v54 }
  0x6d   :  { %511 = vmatmul.f32.gmra.mxu0 %v916_v59 }
  0x71   :  { %555 = vmatmul.f32.gmra.mxu1 %v922_v0 }
  0x73   :  { %643 = vmatmul.f32.gmra.mxu3 %v919_v62 }
  0x74   :  { %606 = vmatmul.f32.gmra.mxu2 %v919_v62 }
  0x75   :  { %516 = vmatmul.f32.gmra.mxu0 %v935_v10 }
  0x79   :  { %561 = vmatmul.f32.gmra.mxu1 %v137_v4 }
  0x9a   :  { %v117_v11 = vpop.f32.mrf.mxu0 }
  0x9b   :  { %v118_v25 = vadd.f32 %v117_v11, %v74_v22 }
  0x9e   :  { %v182_v13 = vpop.f32.mrf.mxu1  ;;  %v266_v15 = vpop.f32.mrf.mxu3 }
  0x9f   :  { %v224_v14 = vpop.f32.mrf.mxu2  ;;  %v183_v28 = vadd.f32 %v182_v13, %v118_v25 }
  0xa1   :  { %v225_v32 = vadd.f32 %v224_v14, %v183_v28 }
  0xa2   :  { %v125_v16 = vpop.f32.mrf.mxu0 }
  0xa3   :  { %v126_v31 = vadd.f32 %v125_v16, %v74_v22  ;;  %v267_v35 = vadd.f32 %v266_v15, %v225_v32 }
  0xa6   :  { %v186_v17 = vpop.f32.mrf.mxu1  ;;  %v272_v19 = vpop.f32.mrf.mxu3 }
  0xa7   :  { %v229_v18 = vpop.f32.mrf.mxu2  ;;  %v187_v36 = vadd.f32 %v186_v17, %v126_v31 }
  0xa9   :  { %v230_v41 = vadd.f32 %v229_v18, %v187_v36 }
  0xaa   :  { %v133_v21 = vpop.f32.mrf.mxu0 }
  0xab   :  { %v134_v40 = vadd.f32 %v133_v21, %v74_v22  ;;  %v273_v45 = vadd.f32 %v272_v19, %v230_v41 }
  0xae   :  { %v190_v23 = vpop.f32.mrf.mxu1  ;;  %v278_v26 = vpop.f32.mrf.mxu3 }
  0xaf   :  { %v234_v24 = vpop.f32.mrf.mxu2  ;;  %v191_v46 = vadd.f32 %v190_v23, %v134_v40 }
  0xb1   :  { %v235_v51 = vadd.f32 %v234_v24, %v191_v46 }
  0xb2   :  { %v141_v27 = vpop.f32.mrf.mxu0 }
  0xb3   :  { %v142_v50 = vadd.f32 %v141_v27, %v74_v22  ;;  %v279_v55 = vadd.f32 %v278_v26, %v235_v51 }
  0xb6   :  { %v194_v29 = vpop.f32.mrf.mxu1  ;;  %v284_v33 = vpop.f32.mrf.mxu3 }
  0xb7   :  { %v239_v30 = vpop.f32.mrf.mxu2  ;;  %v195_v56 = vadd.f32 %v194_v29, %v142_v50 }
  0xb9   :  { %v240_v60 = vadd.f32 %v239_v30, %v195_v56 }
  0xba   :  { %v317_v34 = vpop.f32.mrf.mxu0 }
  0xbb   :  { %v318_v37 = vadd.f32 %v317_v34, %v267_v35  ;;  %v285_v0 = vadd.f32 %v284_v33, %v240_v60 }
  0xbe   :  { %v354_v38 = vpop.f32.mrf.mxu1  ;;  %v460_v43 = vpop.f32.mrf.mxu3 }
  0xbf   :  { %v395_v39 = vpop.f32.mrf.mxu2  ;;  %v355_v42 = vadd.f32 %v354_v38, %v318_v37 }
  0xc0   :  { %v396_v8 = vadd.f32 %v395_v39, %v75_v1 }
  0xc1   :  { %647 = vst [vmem:[#allocation8] sm:$0xff] %v355_v42 }
  0xc2   :  { %v321_v44 = vpop.f32.mrf.mxu0  ;;  %v461_v4 = vadd.f32 %v460_v43, %v396_v8 }
  0xc3   :  { %v322_v47 = vadd.f32 %v321_v44, %v273_v45 }
  0xc6   :  { %v358_v48 = vpop.f32.mrf.mxu1  ;;  %v464_v53 = vpop.f32.mrf.mxu3 }
  0xc7   :  { %v403_v49 = vpop.f32.mrf.mxu2  ;;  %v359_v52 = vadd.f32 %v358_v48, %v322_v47 }
  0xc8   :  { %v404_v13 = vadd.f32 %v403_v49, %v75_v1 }
  0xc9   :  { %649 = vst [vmem:[#allocation8 + $0x10] sm:$0xff] %v359_v52 }
  0xca   :  { %v325_v54 = vpop.f32.mrf.mxu0  ;;  %v465_v18 = vadd.f32 %v464_v53, %v404_v13 }
  0xcb   :  { %v326_v57 = vadd.f32 %v325_v54, %v279_v55 }
  0xce   :  { %v362_v58 = vpop.f32.mrf.mxu1  ;;  %v468_v62 = vpop.f32.mrf.mxu3 }
  0xcf   :  { %v411_v59 = vpop.f32.mrf.mxu2  ;;  %v363_v61 = vadd.f32 %v362_v58, %v326_v57 }
  0xd0   :  { %v412_v23 = vadd.f32 %v411_v59, %v75_v1 }
  0xd1   :  { %651 = vst [vmem:[#allocation8 + $0x20] sm:$0xff] %v363_v61 }
  0xd2   :  { %v329_v63 = vpop.f32.mrf.mxu0  ;;  %v469_v28 = vadd.f32 %v468_v62, %v412_v23 }
  0xd3   :  { %v330_v2 = vadd.f32 %v329_v63, %v285_v0 }
  0xd6   :  { %v366_v6 = vpop.f32.mrf.mxu1  ;;  %v472_v12 = vpop.f32.mrf.mxu3 }
  0xd7   :  { %v419_v7 = vpop.f32.mrf.mxu2  ;;  %v367_v10 = vadd.f32 %v366_v6, %v330_v2 }
  0xd8   :  { %v420_v33 = vadd.f32 %v419_v7, %v75_v1 }
  0xd9   :  { %653 = vst [vmem:[#allocation8 + $0x30] sm:$0xff] %v367_v10 }
  0xda   :  { %v502_v3 = vpop.f32.mrf.mxu0  ;;  %v473_v38 = vadd.f32 %v472_v12, %v420_v33 }
  0xdb   :  { %v503_v5 = vadd.f32 %v502_v3, %v461_v4 }
  0xde   :  { %v544_v9 = vpop.f32.mrf.mxu1  ;;  %v632_v15 = vpop.f32.mrf.mxu3 }
  0xdf   :  { %v595_v11 = vpop.f32.mrf.mxu2  ;;  %v545_v14 = vadd.f32 %v544_v9, %v503_v5 }
  0xe1   :  { %v596_v17 = vadd.f32 %v595_v11, %v545_v14 }
  0xe2   :  { %v507_v16 = vpop.f32.mrf.mxu0 }
  0xe3   :  { %v633_v19 = vadd.f32 %v632_v15, %v596_v17  ;;  %v508_v20 = vadd.f32 %v507_v16, %v465_v18 }
  0xe5   :  { %648 = vst [vmem:[#allocation8 + $0x8] sm:$0xff] %v633_v19 }
  0xe6   :  { %v550_v21 = vpop.f32.mrf.mxu1  ;;  %v636_v25 = vpop.f32.mrf.mxu3 }
  0xe7   :  { %v599_v22 = vpop.f32.mrf.mxu2  ;;  %v551_v24 = vadd.f32 %v550_v21, %v508_v20 }
  0xe9   :  { %v600_v27 = vadd.f32 %v599_v22, %v551_v24 }
  0xea   :  { %v512_v26 = vpop.f32.mrf.mxu0 }
  0xeb   :  { %v637_v29 = vadd.f32 %v636_v25, %v600_v27  ;;  %v513_v30 = vadd.f32 %v512_v26, %v469_v28 }
  0xed   :  { %650 = vst [vmem:[#allocation8 + $0x18] sm:$0xff] %v637_v29 }
  0xee   :  { %v556_v31 = vpop.f32.mrf.mxu1  ;;  %v640_v35 = vpop.f32.mrf.mxu3 }
  0xef   :  { %v603_v32 = vpop.f32.mrf.mxu2  ;;  %v557_v34 = vadd.f32 %v556_v31, %v513_v30 }
  0xf1   :  { %v604_v36 = vadd.f32 %v603_v32, %v557_v34 }
  0xf2   :  { %v517_v37 = vpop.f32.mrf.mxu0 }
  0xf3   :  { %v641_v39 = vadd.f32 %v640_v35, %v604_v36  ;;  %v518_v40 = vadd.f32 %v517_v37, %v473_v38 }
  0xf5   :  { %652 = vst [vmem:[#allocation8 + $0x28] sm:$0xff] %v641_v39 }
  0xf6   :  { %v562_v41 = vpop.f32.mrf.mxu1  ;;  %v644_v44 = vpop.f32.mrf.mxu3 }
  0xf7   :  { %v607_v42 = vpop.f32.mrf.mxu2  ;;  %v563_v43 = vadd.f32 %v562_v41, %v518_v40 }
  0xf9   :  { %v608_v45 = vadd.f32 %v607_v42, %v563_v43 }
  0xfb   :  { %v645_v46 = vadd.f32 %v644_v44, %v608_v45 }
  0xfd   :  { %654 = vst [vmem:[#allocation8 + $0x38] sm:$0xff] %v645_v46 }
  0xfe   :  { %667 = dma.vmem_to_hbm [thread:$0]  %s660_s29, 1024, %s662_s5, [#allocation4], %s786_s20, %s786_s20, %s787_s21  }
  0xff   :  { %783 = dma.done.wait [#allocation4], 1024  }
 0x100   :  { %784 = vsyncadd [#allocation4], 4294966272 }
 0x101   :  { %672 = vsyncpa [#allocation3], 1 }
 0x102   :  { %673 = vsyncpa [#allocation6], 1 }
 0x103   :  { %674 = vsyncpa [#allocation4], 1 }

</bundles_post_ra>
